<compile_context>
chip_gen: v5e
topology: v5e:2x2
jax: 0.10.0
libtpu: 0.0.40
codegen_flags: <defaults>
</compile_context>

<pallas_src>
import jax
import jax.numpy as jnp
from jax.experimental import pallas as pl
from jax.experimental.pallas import tpu as pltpu


def _round_up(x, m):
    return (x + m - 1) // m * m


def _textcnn_kernel(emb_ref, w_ref, bias_ref, mask_ref, fcw_ref, fcb_ref, out_ref):
    TB, L, E = emb_ref.shape            # bf16 [TB, L_pad, E]   (E compact)
    _, KC = w_ref.shape                 # bf16 [E, max_fs * Ct]
    _, Ct = bias_ref.shape              # f32  [1, Ct]
    max_fs = KC // Ct
    N = TB * L

    emb2 = emb_ref[...].reshape(N, E)   # layout-free merge of leading dims

    # One wide MXU matmul: every tap of every filter in a single RHS.
    y = jnp.dot(emb2, w_ref[...], preferred_element_type=jnp.float32)  # [N, max_fs*Ct]

    # Shift-and-add: conv[n, c] = sum_k y[n + k, k*Ct + c].  Each slice is a
    # 128-aligned lane view; roll wrap-around rows are zeroed by mask_ref below.
    acc = y[:, :Ct]
    for k in range(1, max_fs):
        acc = acc + pltpu.roll(y[:, k * Ct:(k + 1) * Ct], shift=N - k, axis=0)

    z = jnp.maximum(acc.reshape(TB, L, Ct) + bias_ref[...], 0.0)        # bias + ReLU
    # Zero-masking is exactly equivalent to -inf masking post-ReLU (z >= 0) and
    # kills roll wrap-around, t >= L - fs + 1, padded time rows and padded channels.
    z = z * mask_ref[...]
    pooled = jnp.max(z, axis=1)                                         # [TB, Ct] f32

    # Dropout: eval-mode identity.
    # TODO(synk): training-mode dropout would need pltpu.prng_seed/prng_random_bits.

    # Lane-dense fc: C is zero-padded to 128 so the output store is unmasked.
    logits = jnp.dot(pooled.astype(jnp.bfloat16), fcw_ref[...],
                     preferred_element_type=jnp.float32) + fcb_ref[...]
    out_ref[...] = logits.astype(out_ref.dtype)


def textcnn_forward(token_ids, embed_table, conv_params, fc_w, fc_b,
                    filter_sizes, num_filters, num_classes, *, batch_tile=64):
    B, L = token_ids.shape
    _, E = embed_table.shape
    n_fs = len(filter_sizes)
    max_fs = max(filter_sizes)
    F = num_filters
    C = num_classes
    assert all(fs <= L for fs in filter_sizes), "filter size exceeds sequence length"

    L_pad = _round_up(L, 8)                  # keep reshapes layout-free
    Ct = _round_up(n_fs * F, 128)            # lane-dense conv/pool channel dim
    C_pad = _round_up(C, 128)                # lane-dense logits / final store

    # Pack per-tap weights along the OUTPUT axis: w_cat[:, k*Ct + i*F:(i+1)*F]
    # holds tap k of filter i (zero for k >= fs_i and for padded channels).
    w_cat = jnp.zeros((E, max_fs * Ct), jnp.float32)
    bias_all = jnp.zeros((1, Ct), jnp.float32)
    mask = jnp.zeros((1, L_pad, Ct), jnp.float32)
    for i, (fs, (w, b)) in enumerate(zip(filter_sizes, conv_params)):
        for k in range(fs):                                   # w: [fs, E, F]
            w_cat = w_cat.at[:, k * Ct + i * F: k * Ct + (i + 1) * F].set(w[k])
        bias_all = bias_all.at[:, i * F:(i + 1) * F].set(b)   # b: [1, F]
        valid = (jnp.arange(L_pad) < (L - fs + 1)).astype(jnp.float32)
        mask = mask.at[0, :, i * F:(i + 1) * F].set(valid[:, None])
    fcw = jnp.zeros((Ct, C_pad), jnp.float32).at[:n_fs * F, :C].set(fc_w)
    fcb = jnp.zeros((1, C_pad), jnp.float32).at[:, :C].set(fc_b)

    # Embedding gather stays in plain JAX but on a bf16 table, so only the
    # compact bf16 [B, L, E] activations hit HBM (no f32 / padded-E copy).
    # TODO(synk): fold the gather into the kernel via PrefetchScalarGridSpec +
    # pl.Element row index_map to skip this HBM round trip entirely.
    emb = jnp.take(embed_table.astype(jnp.bfloat16), token_ids, axis=0)  # [B,L,E] bf16

    batch_tile = max(8, _round_up(batch_tile, 8))
    TB = min(batch_tile, _round_up(B, 8))
    B_pad = _round_up(B, TB)
    n_steps = B_pad // TB
    if n_steps > 1 and n_steps % 2 == 1:
        B_pad += TB          # keep the grid even so v7x's 2 TCs split evenly
    if (B_pad != B) or (L_pad != L):
        emb = jnp.pad(emb, ((0, B_pad - B), (0, L_pad - L), (0, 0)))

    w_cat = w_cat.astype(jnp.bfloat16)
    fcw = fcw.astype(jnp.bfloat16)

    out = pl.pallas_call(
        _textcnn_kernel,
        out_shape=jax.ShapeDtypeStruct((B_pad, C_pad), jnp.float32),
        grid=(B_pad // TB,),
        in_specs=[
            pl.BlockSpec((TB, L_pad, E), lambda b: (b, 0, 0)),       # emb (compact E)
            pl.BlockSpec((E, max_fs * Ct), lambda b: (0, 0)),        # packed conv W
            pl.BlockSpec((1, Ct), lambda b: (0, 0)),                 # conv bias
            pl.BlockSpec((1, L_pad, Ct), lambda b: (0, 0, 0)),       # valid-time mask
            pl.BlockSpec((Ct, C_pad), lambda b: (0, 0)),             # fc weight
            pl.BlockSpec((1, C_pad), lambda b: (0, 0)),              # fc bias
        ],
        out_specs=pl.BlockSpec((TB, C_pad), lambda b: (b, 0)),
        compiler_params=pltpu.CompilerParams(
            dimension_semantics=("parallel",),
            # 48 MiB: > default scoped limit on v5e (16 MiB) / v6e (32 MiB) so
            # larger batch tiles stay double-buffered, < v7x's 64 MiB physical.
            vmem_limit_bytes=48 * 1024 * 1024),
    )(emb, w_cat, bias_all, mask, fcw, fcb)
    return out[:B, :C]


def _textcnn_reference(token_ids, embed_table, conv_params, fc_w, fc_b, filter_sizes):
    """Pure-JAX f32 reference matching the PyTorch forward."""
    emb = jnp.take(embed_table, token_ids, axis=0)                  # [B, L, E]
    pooled = []
    for fs, (w, b) in zip(filter_sizes, conv_params):
        T = emb.shape[1] - fs + 1
        acc = sum(jnp.einsum('bte,ef->btf', emb[:, k:k + T, :], w[k])
                  for k in range(fs))
        acc = jnp.maximum(acc + b[0], 0.0)
        pooled.append(jnp.max(acc, axis=1))
    feats = jnp.concatenate(pooled, axis=1)
    return feats @ fc_w + fc_b


if __name__ == "__main__":
    # Small, module-consistent shapes.
    vocab_size, embed_dim, num_classes = 100, 32, 4
    filter_sizes, num_filters = [2, 3, 4], 8
    B, L = 16, 16

    key = jax.random.PRNGKey(0)
    keys = jax.random.split(key, 2 + 2 * len(filter_sizes) + 2)

    # Deterministic synthetic parameters (shapes follow the nn.Module __init__).
    embed_table = 0.1 * jax.random.normal(keys[0], (vocab_size, embed_dim), jnp.float32)
    conv_params = []
    for i, fs in enumerate(filter_sizes):
        # PyTorch Conv2d weight is [F, 1, fs, E]; stored here as [fs, E, F].
        w = 0.1 * jax.random.normal(keys[1 + 2 * i], (fs, embed_dim, num_filters), jnp.float32)
        b = 0.1 * jax.random.normal(keys[2 + 2 * i], (1, num_filters), jnp.float32)
        conv_params.append((w, b))
    # PyTorch Linear weight is [C, 3F]; stored here transposed as [3F, C].
    fc_w = 0.1 * jax.random.normal(keys[-3], (len(filter_sizes) * num_filters, num_classes), jnp.float32)
    fc_b = 0.1 * jax.random.normal(keys[-2], (1, num_classes), jnp.float32)
    token_ids = jax.random.randint(keys[-1], (B, L), 0, vocab_size, jnp.int32)

    logits = textcnn_forward(token_ids, embed_table, conv_params, fc_w, fc_b,
                             filter_sizes, num_filters, num_classes)
    logits = jax.block_until_ready(logits)
    assert logits.shape == (B, num_classes) and logits.dtype == jnp.float32

    ref = _textcnn_reference(token_ids, embed_table, conv_params, fc_w, fc_b, filter_sizes)
    err = float(jnp.max(jnp.abs(logits - ref)))
    assert err < 5e-2, f"max abs err {err}"   # bf16-input / f32-accum tolerance
    print("KERNEL_OK")
</pallas_src>

<mosaic_0001>
module attributes {stable_mosaic.version = 11 : i64} {
  func.func @_textcnn_kernel(%arg0: i32, %arg1: memref<16x16x32xbf16, #tpu.memory_space<vmem>>, %arg2: memref<32x512xbf16, #tpu.memory_space<vmem>>, %arg3: memref<1x128xf32, #tpu.memory_space<vmem>>, %arg4: memref<1x16x128xf32, #tpu.memory_space<vmem>>, %arg5: memref<128x128xbf16, #tpu.memory_space<vmem>>, %arg6: memref<1x128xf32, #tpu.memory_space<vmem>>, %arg7: memref<16x128xf32, #tpu.memory_space<vmem>>) attributes {dimension_semantics = [#tpu.dimension_semantics<parallel>], iteration_bounds = array<i64: 1>, scalar_prefetch = 0 : i64, scratch_operands = 0 : i64, tpu.core_type = #tpu.core_type<tc>, window_params = [{transform_indices = @transform_0, window_bounds = array<i64: 16, 16, 32>}, {pipeline_mode = #tpu.pipeline_mode<synchronous>, transform_indices = @transform_1, window_bounds = array<i64: 32, 512>}, {pipeline_mode = #tpu.pipeline_mode<synchronous>, transform_indices = @transform_2, window_bounds = array<i64: 1, 128>}, {pipeline_mode = #tpu.pipeline_mode<synchronous>, transform_indices = @transform_3, window_bounds = array<i64: 1, 16, 128>}, {pipeline_mode = #tpu.pipeline_mode<synchronous>, transform_indices = @transform_4, window_bounds = array<i64: 128, 128>}, {pipeline_mode = #tpu.pipeline_mode<synchronous>, transform_indices = @transform_5, window_bounds = array<i64: 1, 128>}, {transform_indices = @transform_6, window_bounds = array<i64: 16, 128>}]} {
    %c0 = arith.constant 0 : index
    %c0_0 = arith.constant 0 : index
    %c0_1 = arith.constant 0 : index
    %0 = vector.load %arg1[%c0, %c0_0, %c0_1] : memref<16x16x32xbf16, #tpu.memory_space<vmem>>, vector<16x16x32xbf16>
    %1 = vector.shape_cast %0 : vector<16x16x32xbf16> to vector<256x32xbf16>
    %c0_2 = arith.constant 0 : index
    %c0_3 = arith.constant 0 : index
    %2 = vector.load %arg2[%c0_2, %c0_3] : memref<32x512xbf16, #tpu.memory_space<vmem>>, vector<32x512xbf16>
    %cst = arith.constant dense<0.000000e+00> : vector<256x512xf32>
    %3 = tpu.matmul %1, %2, %cst {dimension_numbers = #tpu.dot_dimension_numbers<[1], [0], [0], [1], [0, 0, 1, 1], [], []>} : vector<256x32xbf16>, vector<32x512xbf16>, vector<256x512xf32> -> vector<256x512xf32>
    %4 = vector.extract_strided_slice %3 {offsets = [0, 0], sizes = [256, 128], strides = [1, 1]} : vector<256x512xf32> to vector<256x128xf32>
    %5 = vector.extract_strided_slice %3 {offsets = [0, 128], sizes = [256, 128], strides = [1, 1]} : vector<256x512xf32> to vector<256x128xf32>
    %c255_i32 = arith.constant 255 : i32
    %6 = tpu.dynamic_rotate %5 by %c255_i32 dim 0 : vector<256x128xf32>, i32 -> vector<256x128xf32>
    %7 = arith.addf %4, %6 : vector<256x128xf32>
    %8 = vector.extract_strided_slice %3 {offsets = [0, 256], sizes = [256, 128], strides = [1, 1]} : vector<256x512xf32> to vector<256x128xf32>
    %c254_i32 = arith.constant 254 : i32
    %9 = tpu.dynamic_rotate %8 by %c254_i32 dim 0 : vector<256x128xf32>, i32 -> vector<256x128xf32>
    %10 = arith.addf %7, %9 : vector<256x128xf32>
    %11 = vector.extract_strided_slice %3 {offsets = [0, 384], sizes = [256, 128], strides = [1, 1]} : vector<256x512xf32> to vector<256x128xf32>
    %c253_i32 = arith.constant 253 : i32
    %12 = tpu.dynamic_rotate %11 by %c253_i32 dim 0 : vector<256x128xf32>, i32 -> vector<256x128xf32>
    %13 = arith.addf %10, %12 : vector<256x128xf32>
    %14 = vector.shape_cast %13 : vector<256x128xf32> to vector<16x16x128xf32>
    %c0_4 = arith.constant 0 : index
    %c0_5 = arith.constant 0 : index
    %15 = vector.load %arg3[%c0_4, %c0_5] : memref<1x128xf32, #tpu.memory_space<vmem>>, vector<1x128xf32>
    %16 = vector.shape_cast %15 : vector<1x128xf32> to vector<1x1x128xf32>
    %17 = vector.broadcast %16 : vector<1x1x128xf32> to vector<16x16x128xf32>
    %18 = arith.addf %14, %17 : vector<16x16x128xf32>
    %cst_6 = arith.constant 0.000000e+00 : f32
    %19 = vector.broadcast %cst_6 : f32 to vector<16x16x128xf32>
    %20 = arith.maximumf %18, %19 : vector<16x16x128xf32>
    %c0_7 = arith.constant 0 : index
    %c0_8 = arith.constant 0 : index
    %c0_9 = arith.constant 0 : index
    %21 = vector.load %arg4[%c0_7, %c0_8, %c0_9] : memref<1x16x128xf32, #tpu.memory_space<vmem>>, vector<1x16x128xf32>
    %22 = vector.broadcast %21 : vector<1x16x128xf32> to vector<16x16x128xf32>
    %23 = arith.mulf %20, %22 : vector<16x16x128xf32>
    %cst_10 = arith.constant dense<0xFF800000> : vector<16x128xf32>
    %24 = vector.multi_reduction <maximumf>, %23, %cst_10 [1] : vector<16x16x128xf32> to vector<16x128xf32>
    %25 = arith.truncf %24 : vector<16x128xf32> to vector<16x128xbf16>
    %c0_11 = arith.constant 0 : index
    %c0_12 = arith.constant 0 : index
    %26 = vector.load %arg5[%c0_11, %c0_12] : memref<128x128xbf16, #tpu.memory_space<vmem>>, vector<128x128xbf16>
    %cst_13 = arith.constant dense<0.000000e+00> : vector<16x128xf32>
    %27 = tpu.matmul %25, %26, %cst_13 {dimension_numbers = #tpu.dot_dimension_numbers<[1], [0], [0], [1], [0, 0, 1, 1], [], []>} : vector<16x128xbf16>, vector<128x128xbf16>, vector<16x128xf32> -> vector<16x128xf32>
    %c0_14 = arith.constant 0 : index
    %c0_15 = arith.constant 0 : index
    %28 = vector.load %arg6[%c0_14, %c0_15] : memref<1x128xf32, #tpu.memory_space<vmem>>, vector<1x128xf32>
    %29 = vector.broadcast %28 : vector<1x128xf32> to vector<16x128xf32>
    %30 = arith.addf %27, %29 : vector<16x128xf32>
    %c0_16 = arith.constant 0 : index
    %c0_17 = arith.constant 0 : index
    %31 = vector.load %arg7[%c0_16, %c0_17] : memref<16x128xf32, #tpu.memory_space<vmem>>, vector<16x128xf32>
    tpu.vector_store %arg7[%c0_16, %c0_17], %30 {strides = array<i32>} : memref<16x128xf32, #tpu.memory_space<vmem>>, vector<16x128xf32>,
    return
  }
  func.func @transform_0(%arg0: i32) -> (i32, i32, i32) {
    %c0_i32 = arith.constant 0 : i32
    %c0_i32_0 = arith.constant 0 : i32
    %c0_i32_1 = arith.constant 0 : i32
    return %arg0, %c0_i32, %c0_i32_0 : i32, i32, i32
  }
  func.func @transform_1(%arg0: i32) -> (i32, i32) {
    %c0_i32 = arith.constant 0 : i32
    %c0_i32_0 = arith.constant 0 : i32
    %c0_i32_1 = arith.constant 0 : i32
    return %c0_i32, %c0_i32_0 : i32, i32
  }
  func.func @transform_2(%arg0: i32) -> (i32, i32) {
    %c0_i32 = arith.constant 0 : i32
    %c0_i32_0 = arith.constant 0 : i32
    %c0_i32_1 = arith.constant 0 : i32
    return %c0_i32, %c0_i32_0 : i32, i32
  }
  func.func @transform_3(%arg0: i32) -> (i32, i32, i32) {
    %c0_i32 = arith.constant 0 : i32
    %c0_i32_0 = arith.constant 0 : i32
    %c0_i32_1 = arith.constant 0 : i32
    %c0_i32_2 = arith.constant 0 : i32
    return %c0_i32, %c0_i32_0, %c0_i32_1 : i32, i32, i32
  }
  func.func @transform_4(%arg0: i32) -> (i32, i32) {
    %c0_i32 = arith.constant 0 : i32
    %c0_i32_0 = arith.constant 0 : i32
    %c0_i32_1 = arith.constant 0 : i32
    return %c0_i32, %c0_i32_0 : i32, i32
  }
  func.func @transform_5(%arg0: i32) -> (i32, i32) {
    %c0_i32 = arith.constant 0 : i32
    %c0_i32_0 = arith.constant 0 : i32
    %c0_i32_1 = arith.constant 0 : i32
    return %c0_i32, %c0_i32_0 : i32, i32
  }
  func.func @transform_6(%arg0: i32) -> (i32, i32) {
    %c0_i32 = arith.constant 0 : i32
    %c0_i32_0 = arith.constant 0 : i32
    return %arg0, %c0_i32 : i32, i32
  }
}

</mosaic_0001>

<bundles_post_ra>
// kernel: tpu_custom_call.1
= control target key start
LH: loop header
LB: loop body
LE: loop exit
PB: predicated region body
PF: predicated region fallthrough
CT: control target
= control target key end

     0   :  { %11 = vsyncpa [#allocation3], 0  ;;  %s2169_s0 = inlined_call_operand.hbm [shape: bf16[16,16,32], index: 0, kind: input, shape index: {}]   ;;  %s2170_s1 = inlined_call_operand.hbm [shape: bf16[32,512], index: 1, kind: input, shape index: {}]   ;;  %s2171_s2 = inlined_call_operand.vmem [shape: f32[1,128], index: 2, kind: input, shape index: {}]   ;;  %s2172_s3 = inlined_call_operand.hbm [shape: f32[1,16,128], index: 3, kind: input, shape index: {}]   ;;  %s2173_s4 = inlined_call_operand.hbm [shape: bf16[128,128], index: 4, kind: input, shape index: {}]   ;;  %s2174_s5 = inlined_call_operand.vmem [shape: f32[1,128], index: 5, kind: input, shape index: {}]   ;;  %s2175_s6 = inlined_call_operand.hbm [shape: f32[16,128], index: 6, kind: output, shape index: {}]  }
   0x1   :  { %12 = vsyncpa [#allocation6], 0 }
   0x2   :  { %13 = vsyncpa [#allocation9], 0  ;;  %s32_s23 = sshll.u32 %s2170_s1, 4  ;;  %s33_s23 = int_to_ptr.hbm [resolvable:$true] %s32_s23 }
   0x3   :  { %14 = vsyncpa [#allocation4], 0  ;;  %s1704_s24 = smov [#allocation5]   ;;  %s19_s28 = sshll.u32 %s2169_s0, 4  ;;  %s20_s28 = int_to_ptr.hbm [resolvable:$true] %s19_s28 }
   0x4   :  { %s34_s25 = sshll.u32 %s1704_s24, 4  ;;  %s1705_s29 = smov 256   ;;  %s35_s25 = int_to_ptr.vmem [resolvable:$true] %s34_s25 }
   0x5   :  { %s1706_s30 = smov 16   ;;  %s1707_s7 = smov [#allocation2]  }
   0x6   :  { %40 = dma.hbm_to_vmem [thread:$0]  %s33_s23, 1024, %s35_s25, [#allocation6], %s1705_s29, %s1705_s29, %s1706_s30  }
   0x7   :  { %s21_s8 = sshll.u32 %s1707_s7, 4  ;;  %s1708_s9 = smov 64   ;;  %s22_s8 = int_to_ptr.vmem [resolvable:$true] %s21_s8 }
   0x8   :  { %s1709_s10 = smov 4   ;;  %s47_s12 = sshll.u32 %s2172_s3, 4  ;;  %s48_s12 = int_to_ptr.hbm [resolvable:$true] %s47_s12 }
   0x9   :  { %27 = dma.hbm_to_vmem [thread:$0]  %s20_s28, 2048, %s22_s8, [#allocation3], %s1708_s9, %s1708_s9, %s1709_s10  }
   0xa   :  { %s1710_s13 = smov [#allocation7]   ;;  %s60_s16 = sshll.u32 %s2173_s4, 4  ;;  %s61_s16 = int_to_ptr.hbm [resolvable:$true] %s60_s16 }
   0xb   :  { %s49_s14 = sshll.u32 %s1710_s13, 4  ;;  %s1711_s17 = smov 128   ;;  %s50_s14 = int_to_ptr.vmem [resolvable:$true] %s49_s14 }
   0xc   :  { %s1712_s18 = smov 8   ;;  %s1713_s19 = smov [#allocation8]  }
   0xd   :  { %55 = dma.hbm_to_vmem [thread:$0]  %s48_s12, 256, %s50_s14, [#allocation6], %s1711_s17, %s1711_s17, %s1712_s18  }
   0xe   :  { %s62_s20 = sshll.u32 %s1713_s19, 4  ;;  %s63_s20 = int_to_ptr.vmem [resolvable:$true] %s62_s20 }
   0xf   :  { %68 = dma.hbm_to_vmem [thread:$0]  %s61_s16, 1024, %s63_s20, [#allocation9], %s1708_s9, %s1708_s9, %s1709_s10  }
  0x10   :  { %1696 = dma.done.wait [#allocation3], 2048  }
  0x11   :  { %1697 = vsyncadd [#allocation3], 4294965248 }
  0x12   :  { %1698 = dma.done.wait [#allocation6], 1280  }
  0x13   :  { %1699 = vsyncadd [#allocation6], 4294966016 }
  0x14   :  { %1700 = dma.done.wait [#allocation9], 1024  }
  0x15   :  { %1701 = vsyncadd [#allocation9], 4294966272  ;;  %v1418_v0 = vld [vmem:[#allocation5 + $0x20] sm:$0xf]  ;;  %v1550_v1 = vld [vmem:[#allocation5 + $0x2c] sm:$0xf0]  ;;  %v685_v35 = vlaneseq }
  0x16   :  { %v1548_v2 = vld [vmem:[#allocation5 + $0x24] sm:$0xf]  ;;  %v1419_v3 = vor.u32 %v1550_v1, %v1418_v0  ;;  %v1420_v4 = vld [vmem:[#allocation5 + $0x30] sm:$0xf0]  ;;  %v1426_v5 = vld [vmem:[#allocation5 + $0x28] sm:$0xf] }
  0x17   :  { %v1551_v6 = vld [vmem:[#allocation5 + $0x34] sm:$0xf0]  ;;  %v1423_v7 = vor.u32 %v1548_v2, %v1420_v4  ;;  %v1549_v9 = vld [vmem:[#allocation5 + $0x2c] sm:$0xf]  ;;  %v1428_v10 = vld [vmem:[#allocation5 + $0x38] sm:$0xf0] }
  0x18   :  { %v1427_v8 = vor.u32 %v1551_v6, %v1426_v5  ;;  %v1402_v11 = vld [vmem:[#allocation5] sm:$0xf]  ;;  %303 = vmatpush.bf16.msra.mxu0 %v1419_v3  ;;  %v1431_v12 = vor.u32 %v1549_v9, %v1428_v10  ;;  %v1546_v13 = vld [vmem:[#allocation5 + $0xc] sm:$0xf0]  ;;  %v1544_v14 = vld [vmem:[#allocation5 + $0x4] sm:$0xf] }
  0x19   :  { %v1404_v15 = vld [vmem:[#allocation5 + $0x10] sm:$0xf0]  ;;  %392 = vmatpush.bf16.msra.mxu1 %v1423_v7  ;;  %v1403_v16 = vor.u32 %v1546_v13, %v1402_v11  ;;  %v1410_v18 = vld [vmem:[#allocation5 + $0x8] sm:$0xf]  ;;  %v1547_v19 = vld [vmem:[#allocation5 + $0x14] sm:$0xf0] }
  0x1a   :  { %481 = vmatpush.bf16.msra.mxu2 %v1427_v8  ;;  %v1407_v17 = vor.u32 %v1544_v14, %v1404_v15  ;;  %v1545_v20 = vld [vmem:[#allocation5 + $0xc] sm:$0xf]  ;;  %570 = vmatpush.bf16.msra.mxu3 %v1431_v12  ;;  %v1411_v21 = vor.u32 %v1547_v19, %v1410_v18  ;;  %v1412_v22 = vld [vmem:[#allocation5 + $0x18] sm:$0xf0]  ;;  %v1528_v24 = vld [vmem:[#allocation2] sm:$0xff]  ;;  %vm248_vm0 = vcmask 261120  }
  0x1b   :  { %v1415_v23 = vor.u32 %v1545_v20, %v1412_v22  ;;  %v1529_v25 = vld [vmem:[#allocation2 + $0x8] sm:$0xff]  ;;  %v1530_v26 = vld [vmem:[#allocation2 + $0x10] sm:$0xff]  ;;  %v1531_v27 = vld [vmem:[#allocation2 + $0x18] sm:$0xff]  ;;  %v1803_v36 = vshrl.u32 %v685_v35, 7  ;;  %vm1228_vm4 = vcmask 1041409   ;;  %vm1230_vm5 = vcmask 1042434  }
  0x1c   :  { %304 = vmatpush.bf16.msra.mxu0 %v1403_v16  ;;  %v1532_v28 = vld [vmem:[#allocation2 + $0x20] sm:$0xff]  ;;  %v1533_v29 = vld [vmem:[#allocation2 + $0x28] sm:$0xff]  ;;  %v1534_v30 = vld [vmem:[#allocation2 + $0x30] sm:$0xff]  ;;  %vm1232_vm6 = vcmask 1043459   ;;  %vm1234_vm7 = vcmask 1044484   ;;  %vm1236_vm8 = vcmask 1045509  }
  0x1d   :  { %393 = vmatpush.bf16.msra.mxu1 %v1407_v17  ;;  %v1535_v31 = vld [vmem:[#allocation2 + $0x38] sm:$0xff]  ;;  %v1536_v32 = vld [vmem:[#allocation2 + $0x40] sm:$0xff]  ;;  %vm687_vm1 = vcmp.lt.s32.totalorder %v1803_v36, 7  ;;  %vm784_vm2 = vcmp.lt.s32.totalorder %v1803_v36, 6  ;;  %v1537_v46 = vld [vmem:[#allocation2 + $0x48] sm:$0xff]  ;;  %vm881_vm3 = vcmp.lt.s32.totalorder %v1803_v36, 5 }
  0x1e   :  { %482 = vmatpush.bf16.msra.mxu2 %v1411_v21  ;;  %571 = vmatpush.bf16.msra.mxu3 %v1415_v23  ;;  %v1559_v61 = vld [vmem:[#allocation8 + $0x38] sm:$0xff]  ;;  %v1836_v62 = vld [vmem:[%s2171_s2] ss:$0 sm:$0xff]  ;;  %v1538_v16 = vld [vmem:[#allocation2 + $0x50] sm:$0xff]  ;;  %vm1238_vm9 = vcmask 1046534   ;;  %vm1240_vm10 = vcmask 1047559  }
  0x1f   :  { %1432 = vmatmul.msk.bf16.vlgmr.msra.gmra.mxu0 %vm248_vm0, %v1528_v24  ;;  %v1846_v17 = vld [vmem:[#allocation7] sm:$0xff]  ;;  %v1848_v18 = vld [vmem:[#allocation7 + $0x8] sm:$0xff]  ;;  %s1714_s24 = smov [#allocation10]   ;;  %s1321_s28 = sshll.u32 %s2175_s6, 4  ;;  %s1322_s28 = int_to_ptr.hbm [resolvable:$true] %s1321_s28 }
  0x20   :  { %1448 = vmatmul.msk.bf16.vlgmr.msra.gmra.mxu1 %vm248_vm0, %v1528_v24  ;;  %1299 = vmatpush.bf16.msrb.mxu0 %v1559_v61  ;;  %v1539_v61 = vld [vmem:[#allocation2 + $0x58] sm:$0xff]  ;;  %s1319_s25 = sshll.u32 %s1714_s24, 4  ;;  %s1320_s25 = int_to_ptr.vmem [resolvable:$true] %s1319_s25 }
  0x21   :  { %1464 = vmatmul.msk.bf16.vlgmr.msra.gmra.mxu2 %vm248_vm0, %v1528_v24  ;;  %1480 = vmatmul.msk.bf16.vlgmr.msra.gmra.mxu3 %vm248_vm0, %v1528_v24 }
  0x2f   :  { %1433 = vmatmul.msk.bf16.gmra.mxu0 %vm248_vm0, %v1529_v25 }
  0x30   :  { %1449 = vmatmul.msk.bf16.gmra.mxu1 %vm248_vm0, %v1529_v25 }
  0x31   :  { %1465 = vmatmul.msk.bf16.gmra.mxu2 %vm248_vm0, %v1529_v25  ;;  %1481 = vmatmul.msk.bf16.gmra.mxu3 %vm248_vm0, %v1529_v25 }
  0x3f   :  { %1434 = vmatmul.msk.bf16.gmra.mxu0 %vm248_vm0, %v1530_v26 }
  0x40   :  { %1450 = vmatmul.msk.bf16.gmra.mxu1 %vm248_vm0, %v1530_v26 }
  0x41   :  { %1466 = vmatmul.msk.bf16.gmra.mxu2 %vm248_vm0, %v1530_v26  ;;  %1482 = vmatmul.msk.bf16.gmra.mxu3 %vm248_vm0, %v1530_v26 }
  0x4f   :  { %1435 = vmatmul.msk.bf16.gmra.mxu0 %vm248_vm0, %v1531_v27 }
  0x50   :  { %1451 = vmatmul.msk.bf16.gmra.mxu1 %vm248_vm0, %v1531_v27 }
  0x51   :  { %1467 = vmatmul.msk.bf16.gmra.mxu2 %vm248_vm0, %v1531_v27  ;;  %1483 = vmatmul.msk.bf16.gmra.mxu3 %vm248_vm0, %v1531_v27 }
  0x5f   :  { %1436 = vmatmul.msk.bf16.gmra.mxu0 %vm248_vm0, %v1532_v28 }
  0x60   :  { %1452 = vmatmul.msk.bf16.gmra.mxu1 %vm248_vm0, %v1532_v28 }
  0x61   :  { %1468 = vmatmul.msk.bf16.gmra.mxu2 %vm248_vm0, %v1532_v28  ;;  %1484 = vmatmul.msk.bf16.gmra.mxu3 %vm248_vm0, %v1532_v28 }
  0x6f   :  { %1437 = vmatmul.msk.bf16.gmra.mxu0 %vm248_vm0, %v1533_v29 }
  0x70   :  { %1453 = vmatmul.msk.bf16.gmra.mxu1 %vm248_vm0, %v1533_v29 }
  0x71   :  { %1469 = vmatmul.msk.bf16.gmra.mxu2 %vm248_vm0, %v1533_v29  ;;  %1485 = vmatmul.msk.bf16.gmra.mxu3 %vm248_vm0, %v1533_v29 }
  0x7f   :  { %1438 = vmatmul.msk.bf16.gmra.mxu0 %vm248_vm0, %v1534_v30 }
  0x80   :  { %1454 = vmatmul.msk.bf16.gmra.mxu1 %vm248_vm0, %v1534_v30 }
  0x81   :  { %1470 = vmatmul.msk.bf16.gmra.mxu2 %vm248_vm0, %v1534_v30  ;;  %1486 = vmatmul.msk.bf16.gmra.mxu3 %vm248_vm0, %v1534_v30 }
  0x8f   :  { %1439 = vmatmul.msk.bf16.gmra.mxu0 %vm248_vm0, %v1535_v31 }
  0x90   :  { %1455 = vmatmul.msk.bf16.gmra.mxu1 %vm248_vm0, %v1535_v31 }
  0x91   :  { %1471 = vmatmul.msk.bf16.gmra.mxu2 %vm248_vm0, %v1535_v31  ;;  %1487 = vmatmul.msk.bf16.gmra.mxu3 %vm248_vm0, %v1535_v31 }
  0x9c   :  { %v306_v33 = vpop.f32.mrf.mxu0 }
  0x9d   :  { %v1797_v34 = vpop.f32.mrf.mxu1 }
  0x9e   :  { %v653_v41 = vrot.slane %v1797_v34, 1 }
  0x9f   :  { %1440 = vmatmul.msk.bf16.gmra.mxu0 %vm248_vm0, %v1536_v32 }
  0xa0   :  { %1456 = vmatmul.msk.bf16.gmra.mxu1 %vm248_vm0, %v1536_v32 }
  0xa1   :  { %1472 = vmatmul.msk.bf16.gmra.mxu2 %vm248_vm0, %v1536_v32  ;;  %1488 = vmatmul.msk.bf16.gmra.mxu3 %vm248_vm0, %v1536_v32 }
  0xa4   :  { %v1805_v37 = vpop.f32.mrf.mxu2  ;;  %v1807_v38 = vpop.f32.mrf.mxu3 }
  0xa5   :  { %v308_v39 = vpop.f32.mrf.mxu0  ;;  %v397_v40 = vpop.f32.mrf.mxu1  ;;  %v752_v47 = vrot.slane %v1805_v37, 2  ;;  %v849_v51 = vrot.slane %v1807_v38, 3 }
  0xa6   :  { %v654_v42 = vrot.slane %v397_v40, 1 }
  0xa8   :  { %v718_v43 = vsel %vm687_vm1, %v653_v41, %v654_v42 }
  0xa9   :  { %v720_v44 = vadd.f32 %v718_v43, %v306_v33 }
  0xac   :  { %v486_v45 = vpop.f32.mrf.mxu2  ;;  %v575_v49 = vpop.f32.mrf.mxu3 }
  0xad   :  { %v753_v48 = vrot.slane %v486_v45, 2  ;;  %v311_v50 = vpop.f32.mrf.mxu0  ;;  %v850_v52 = vrot.slane %v575_v49, 3  ;;  %v400_v53 = vpop.f32.mrf.mxu1 }
  0xae   :  { %v655_v55 = vrot.slane %v400_v53, 1 }
  0xaf   :  { %v815_v54 = vsel %vm784_vm2, %v752_v47, %v753_v48  ;;  %v912_v57 = vsel %vm881_vm3, %v849_v51, %v850_v52  ;;  %1441 = vmatmul.msk.bf16.gmra.mxu0 %vm248_vm0, %v1537_v46 }
  0xb0   :  { %v817_v56 = vadd.f32 %v815_v54, %v720_v44  ;;  %v717_v58 = vsel %vm687_vm1, %v654_v42, %v655_v55  ;;  %1457 = vmatmul.msk.bf16.gmra.mxu1 %vm248_vm0, %v1537_v46 }
  0xb1   :  { %1473 = vmatmul.msk.bf16.gmra.mxu2 %vm248_vm0, %v1537_v46  ;;  %v721_v60 = vadd.f32 %v717_v58, %v308_v39  ;;  %1489 = vmatmul.msk.bf16.gmra.mxu3 %vm248_vm0, %v1537_v46 }
  0xb2   :  { %v914_v59 = vadd.f32 %v912_v57, %v817_v56 }
  0xb4   :  { %v489_v63 = vpop.f32.mrf.mxu2  ;;  %v578_v1 = vpop.f32.mrf.mxu3  ;;  %v950_v7 = vadd.f32 %v1836_v62, %v914_v59 }
  0xb5   :  { %v754_v0 = vrot.slane %v489_v63, 2  ;;  %v313_v2 = vpop.f32.mrf.mxu0  ;;  %v851_v3 = vrot.slane %v578_v1, 3  ;;  %v402_v4 = vpop.f32.mrf.mxu1 }
  0xb6   :  { %v656_v6 = vrot.slane %v402_v4, 1  ;;  %v982_v13 = vmax.f32 %v950_v7, 0.0 }
  0xb7   :  { %v814_v5 = vsel %vm784_vm2, %v753_v48, %v754_v0  ;;  %v911_v9 = vsel %vm881_vm3, %v850_v52, %v851_v3 }
  0xb8   :  { %v818_v8 = vadd.f32 %v814_v5, %v721_v60  ;;  %v716_v10 = vsel %vm687_vm1, %v655_v55, %v656_v6  ;;  %v1016_v27 = vmul.f32 %v1846_v17, %v982_v13 }
  0xb9   :  { %v722_v12 = vadd.f32 %v716_v10, %v311_v50 }
  0xba   :  { %v915_v11 = vadd.f32 %v911_v9, %v818_v8 }
  0xbc   :  { %v951_v14 = vadd.f32 %v1836_v62, %v915_v11  ;;  %v491_v15 = vpop.f32.mrf.mxu2  ;;  %v580_v20 = vpop.f32.mrf.mxu3 }
  0xbd   :  { %v755_v19 = vrot.slane %v491_v15, 2  ;;  %v316_v21 = vpop.f32.mrf.mxu0  ;;  %v852_v23 = vrot.slane %v580_v20, 3  ;;  %v405_v24 = vpop.f32.mrf.mxu1 }
  0xbe   :  { %v983_v22 = vmax.f32 %v951_v14, 0.0  ;;  %v657_v26 = vrot.slane %v405_v24, 1 }
  0xbf   :  { %v813_v25 = vsel %vm784_vm2, %v754_v0, %v755_v19  ;;  %v910_v30 = vsel %vm881_vm3, %v851_v3, %v852_v23  ;;  %1442 = vmatmul.msk.bf16.gmra.mxu0 %vm248_vm0, %v1538_v16 }
  0xc0   :  { %v1017_v28 = vmul.f32 %v1848_v18, %v983_v22  ;;  %v819_v29 = vadd.f32 %v813_v25, %v722_v12  ;;  %v715_v31 = vsel %vm687_vm1, %v656_v6, %v657_v26  ;;  %1458 = vmatmul.msk.bf16.gmra.mxu1 %vm248_vm0, %v1538_v16 }
  0xc1   :  { %1474 = vmatmul.msk.bf16.gmra.mxu2 %vm248_vm0, %v1538_v16  ;;  %v723_v35 = vadd.f32 %v715_v31, %v313_v2  ;;  %1490 = vmatmul.msk.bf16.gmra.mxu3 %vm248_vm0, %v1538_v16 }
  0xc2   :  { %v1048_v32 = vmax.f32 %v1016_v27, %v1017_v28  ;;  %v916_v33 = vadd.f32 %v910_v30, %v819_v29 }
  0xc4   :  { %v494_v39 = vpop.f32.mrf.mxu2  ;;  %v1049_v40 = vrot.slane %v1048_v32, 4  ;;  %v583_v43 = vpop.f32.mrf.mxu3  ;;  %v952_v50 = vadd.f32 %v1836_v62, %v916_v33 }
  0xc5   :  { %v756_v42 = vrot.slane %v494_v39, 2  ;;  %v318_v44 = vpop.f32.mrf.mxu0  ;;  %v853_v45 = vrot.slane %v583_v43, 3  ;;  %v407_v46 = vpop.f32.mrf.mxu1 }
  0xc6   :  { %v658_v49 = vrot.slane %v407_v46, 1  ;;  %v1050_v54 = vmax.f32 %v1048_v32, %v1049_v40  ;;  %v984_v58 = vmax.f32 %v952_v50, 0.0  ;;  %v1540_v50 = vld [vmem:[#allocation2 + $0x60] sm:$0xff] }
  0xc7   :  { %v812_v48 = vsel %vm784_vm2, %v755_v19, %v756_v42  ;;  %v909_v53 = vsel %vm881_vm3, %v852_v23, %v853_v45  ;;  %v1558_v19 = vld [vmem:[#allocation8 + $0x30] sm:$0xff] }
  0xc8   :  { %v820_v52 = vadd.f32 %v812_v48, %v723_v35  ;;  %v714_v55 = vsel %vm687_vm1, %v657_v26, %v658_v49  ;;  %v1051_v63 = vrot.slane %v1050_v54, 2  ;;  %v1018_v8 = vmul.f32 %v1846_v17, %v984_v58  ;;  %1300 = vmatpush.bf16.msrb.mxu0 %v1558_v19 }
  0xc9   :  { %v724_v57 = vadd.f32 %v714_v55, %v316_v21 }
  0xca   :  { %v917_v56 = vadd.f32 %v909_v53, %v820_v52  ;;  %v1052_v12 = vmax.f32 %v1050_v54, %v1051_v63 }
  0xcc   :  { %v953_v59 = vadd.f32 %v1836_v62, %v917_v56  ;;  %v496_v60 = vpop.f32.mrf.mxu2  ;;  %v585_v1 = vpop.f32.mrf.mxu3  ;;  %v1053_v22 = vrot.slane %v1052_v12, 1 }
  0xcd   :  { %v757_v0 = vrot.slane %v496_v60, 2  ;;  %v321_v2 = vpop.f32.mrf.mxu0  ;;  %v854_v4 = vrot.slane %v585_v1, 3  ;;  %v410_v5 = vpop.f32.mrf.mxu1 }
  0xce   :  { %v985_v3 = vmax.f32 %v953_v59, 0.0  ;;  %v659_v7 = vrot.slane %v410_v5, 1  ;;  %v1054_v39 = vmax.f32 %v1052_v12, %v1053_v22 }
  0xcf   :  { %v811_v6 = vsel %vm784_vm2, %v756_v42, %v757_v0  ;;  %v908_v11 = vsel %vm881_vm3, %v853_v45, %v854_v4  ;;  %1443 = vmatmul.msk.bf16.gmra.mxu0 %vm248_vm0, %v1539_v61 }
  0xd0   :  { %v1019_v9 = vmul.f32 %v1848_v18, %v985_v3  ;;  %v821_v10 = vadd.f32 %v811_v6, %v724_v57  ;;  %v713_v13 = vsel %vm687_vm1, %v658_v49, %v659_v7  ;;  %1459 = vmatmul.msk.bf16.gmra.mxu1 %vm248_vm0, %v1539_v61  ;;  %v1160_v52 = vpack.c.bf16 %v1054_v39, %v1054_v39  ;;  %v1541_v39 = vld [vmem:[#allocation2 + $0x68] sm:$0xff] }
  0xd1   :  { %1475 = vmatmul.msk.bf16.gmra.mxu2 %vm248_vm0, %v1539_v61  ;;  %v725_v16 = vadd.f32 %v713_v13, %v318_v44  ;;  %1491 = vmatmul.msk.bf16.gmra.mxu3 %vm248_vm0, %v1539_v61 }
  0xd2   :  { %v1055_v14 = vmax.f32 %v1018_v8, %v1019_v9  ;;  %v918_v15 = vadd.f32 %v908_v11, %v821_v10 }
  0xd4   :  { %v1056_v20 = vrot.slane %v1055_v14, 4  ;;  %v499_v21 = vpop.f32.mrf.mxu2  ;;  %v588_v24 = vpop.f32.mrf.mxu3  ;;  %v954_v29 = vadd.f32 %v1836_v62, %v918_v15 }
  0xd5   :  { %v758_v23 = vrot.slane %v499_v21, 2  ;;  %v323_v25 = vpop.f32.mrf.mxu0  ;;  %v855_v27 = vrot.slane %v588_v24, 3  ;;  %v412_v28 = vpop.f32.mrf.mxu1 }
  0xd6   :  { %v1057_v26 = vmax.f32 %v1055_v14, %v1056_v20  ;;  %v660_v31 = vrot.slane %v412_v28, 1  ;;  %v986_v45 = vmax.f32 %v954_v29, 0.0 }
  0xd7   :  { %v810_v30 = vsel %vm784_vm2, %v757_v0, %v758_v23  ;;  %v907_v35 = vsel %vm881_vm3, %v854_v4, %v855_v27  ;;  %v1212_v4 = vunpack.c.l.b16 %v1160_v52 }
  0xd8   :  { %v1058_v32 = vrot.slane %v1057_v26, 2  ;;  %v822_v33 = vadd.f32 %v810_v30, %v725_v16  ;;  %v712_v40 = vsel %vm687_vm1, %v659_v7, %v660_v31  ;;  %v1020_v60 = vmul.f32 %v1846_v17, %v986_v45 }
  0xd9   :  { %v726_v44 = vadd.f32 %v712_v40, %v321_v2 }
  0xda   :  { %v1059_v42 = vmax.f32 %v1057_v26, %v1058_v32  ;;  %v919_v43 = vadd.f32 %v907_v35, %v822_v33 }
  0xdc   :  { %v1060_v46 = vrot.slane %v1059_v42, 1  ;;  %v955_v48 = vadd.f32 %v1836_v62, %v919_v43  ;;  %v501_v49 = vpop.f32.mrf.mxu2  ;;  %v590_v54 = vpop.f32.mrf.mxu3 }
  0xdd   :  { %v759_v53 = vrot.slane %v501_v49, 2  ;;  %v326_v55 = vpop.f32.mrf.mxu0  ;;  %v856_v58 = vrot.slane %v590_v54, 3  ;;  %v415_v59 = vpop.f32.mrf.mxu1 }
  0xde   :  { %v1061_v56 = vmax.f32 %v1059_v42, %v1060_v46  ;;  %v987_v57 = vmax.f32 %v955_v48, 0.0  ;;  %v661_v63 = vrot.slane %v415_v59, 1 }
  0xdf   :  { %v809_v61 = vsel %vm784_vm2, %v758_v23, %v759_v53  ;;  %v906_v3 = vsel %vm881_vm3, %v855_v27, %v856_v58  ;;  %1444 = vmatmul.msk.bf16.gmra.mxu0 %vm248_vm0, %v1540_v50 }
  0xe0   :  { %v1161_v0 = vpack.c.bf16 %v1061_v56, %v1061_v56  ;;  %v1021_v1 = vmul.f32 %v1848_v18, %v987_v57  ;;  %v823_v2 = vadd.f32 %v809_v61, %v726_v44  ;;  %v711_v5 = vsel %vm687_vm1, %v660_v31, %v661_v63  ;;  %1460 = vmatmul.msk.bf16.gmra.mxu1 %vm248_vm0, %v1540_v50  ;;  %v1557_v61 = vld [vmem:[#allocation8 + $0x28] sm:$0xff] }
  0xe1   :  { %1476 = vmatmul.msk.bf16.gmra.mxu2 %vm248_vm0, %v1540_v50  ;;  %v727_v9 = vadd.f32 %v711_v5, %v323_v25  ;;  %1492 = vmatmul.msk.bf16.gmra.mxu3 %vm248_vm0, %v1540_v50 }
  0xe2   :  { %v1213_v6 = vunpack.c.l.b16 %v1161_v0  ;;  %v1062_v7 = vmax.f32 %v1020_v60, %v1021_v1  ;;  %v920_v8 = vadd.f32 %v906_v3, %v823_v2  ;;  %1301 = vmatpush.bf16.msrb.mxu0 %v1557_v61 }
  0xe4   :  { %v1063_v10 = vrot.slane %v1062_v7, 4  ;;  %v504_v11 = vpop.f32.mrf.mxu2  ;;  %v1229_v12 = vsel %vm1228_vm4, %v1213_v6, %v1212_v4  ;;  %v593_v14 = vpop.f32.mrf.mxu3  ;;  %v956_v21 = vadd.f32 %v1836_v62, %v920_v8 }
  0xe5   :  { %v760_v13 = vrot.slane %v504_v11, 2  ;;  %v328_v15 = vpop.f32.mrf.mxu0  ;;  %v857_v19 = vrot.slane %v593_v14, 3  ;;  %v417_v20 = vpop.f32.mrf.mxu1 }
  0xe6   :  { %v1064_v16 = vmax.f32 %v1062_v7, %v1063_v10  ;;  %v662_v23 = vrot.slane %v417_v20, 1  ;;  %v988_v31 = vmax.f32 %v956_v21, 0.0 }
  0xe7   :  { %v808_v22 = vsel %vm784_vm2, %v759_v53, %v760_v13  ;;  %v905_v26 = vsel %vm881_vm3, %v856_v58, %v857_v19 }
  0xe8   :  { %v1065_v24 = vrot.slane %v1064_v16, 2  ;;  %v824_v25 = vadd.f32 %v808_v22, %v727_v9  ;;  %v710_v27 = vsel %vm687_vm1, %v661_v63, %v662_v23  ;;  %v1022_v49 = vmul.f32 %v1846_v17, %v988_v31 }
  0xe9   :  { %v728_v30 = vadd.f32 %v710_v27, %v326_v55 }
  0xea   :  { %v1066_v28 = vmax.f32 %v1064_v16, %v1065_v24  ;;  %v921_v29 = vadd.f32 %v905_v26, %v824_v25  ;;  %v1542_v25 = vld [vmem:[#allocation2 + $0x70] sm:$0xff] }
  0xec   :  { %v1067_v32 = vrot.slane %v1066_v28, 1  ;;  %v957_v33 = vadd.f32 %v1836_v62, %v921_v29  ;;  %v506_v35 = vpop.f32.mrf.mxu2  ;;  %v595_v42 = vpop.f32.mrf.mxu3 }
  0xed   :  { %v761_v40 = vrot.slane %v506_v35, 2  ;;  %v331_v43 = vpop.f32.mrf.mxu0  ;;  %v858_v46 = vrot.slane %v595_v42, 3  ;;  %v420_v48 = vpop.f32.mrf.mxu1 }
  0xee   :  { %v1068_v44 = vmax.f32 %v1066_v28, %v1067_v32  ;;  %v989_v45 = vmax.f32 %v957_v33, 0.0  ;;  %v663_v52 = vrot.slane %v420_v48, 1 }
  0xef   :  { %v807_v50 = vsel %vm784_vm2, %v760_v13, %v761_v40  ;;  %v904_v56 = vsel %vm881_vm3, %v857_v19, %v858_v46  ;;  %1445 = vmatmul.msk.bf16.gmra.mxu0 %vm248_vm0, %v1541_v39 }
  0xf0   :  { %v1162_v53 = vpack.c.bf16 %v1068_v44, %v1068_v44  ;;  %v1023_v54 = vmul.f32 %v1848_v18, %v989_v45  ;;  %v825_v55 = vadd.f32 %v807_v50, %v728_v30  ;;  %v709_v57 = vsel %vm687_vm1, %v662_v23, %v663_v52  ;;  %1461 = vmatmul.msk.bf16.gmra.mxu1 %vm248_vm0, %v1541_v39 }
  0xf1   :  { %1477 = vmatmul.msk.bf16.gmra.mxu2 %vm248_vm0, %v1541_v39  ;;  %1493 = vmatmul.msk.bf16.gmra.mxu3 %vm248_vm0, %v1541_v39  ;;  %v729_v6 = vadd.f32 %v709_v57, %v328_v15 }
  0xf2   :  { %v1214_v58 = vunpack.c.l.b16 %v1162_v53  ;;  %v1069_v59 = vmax.f32 %v1022_v49, %v1023_v54  ;;  %v922_v60 = vadd.f32 %v904_v56, %v825_v55 }
  0xf4   :  { %v1070_v63 = vrot.slane %v1069_v59, 4  ;;  %v509_v0 = vpop.f32.mrf.mxu2  ;;  %v1231_v1 = vsel %vm1230_vm5, %v1214_v58, %v1229_v12  ;;  %v598_v3 = vpop.f32.mrf.mxu3  ;;  %v958_v9 = vadd.f32 %v1836_v62, %v922_v60 }
  0xf5   :  { %v762_v2 = vrot.slane %v509_v0, 2  ;;  %v333_v4 = vpop.f32.mrf.mxu0  ;;  %v859_v7 = vrot.slane %v598_v3, 3  ;;  %v422_v8 = vpop.f32.mrf.mxu1 }
  0xf6   :  { %v1071_v5 = vmax.f32 %v1069_v59, %v1070_v63  ;;  %v664_v11 = vrot.slane %v422_v8, 1  ;;  %v990_v15 = vmax.f32 %v958_v9, 0.0  ;;  %v1556_v8 = vld [vmem:[#allocation8 + $0x20] sm:$0xff] }
  0xf7   :  { %v806_v10 = vsel %vm784_vm2, %v761_v40, %v762_v2  ;;  %v903_v16 = vsel %vm881_vm3, %v858_v46, %v859_v7  ;;  %1302 = vmatpush.bf16.msrb.mxu0 %v1556_v8 }
  0xf8   :  { %v1072_v13 = vrot.slane %v1071_v5, 2  ;;  %v826_v14 = vadd.f32 %v806_v10, %v729_v6  ;;  %v708_v12 = vsel %vm687_vm1, %v663_v52, %v664_v11  ;;  %v1024_v33 = vmul.f32 %v1846_v17, %v990_v15 }
  0xf9   :  { %v730_v21 = vadd.f32 %v708_v12, %v331_v43 }
  0xfa   :  { %v1073_v19 = vmax.f32 %v1071_v5, %v1072_v13  ;;  %v923_v20 = vadd.f32 %v903_v16, %v826_v14  ;;  %v1543_v14 = vld [vmem:[#allocation2 + $0x78] sm:$0xff] }
  0xfc   :  { %v1074_v22 = vrot.slane %v1073_v19, 1  ;;  %v959_v23 = vadd.f32 %v1836_v62, %v923_v20  ;;  %v511_v24 = vpop.f32.mrf.mxu2  ;;  %v600_v27 = vpop.f32.mrf.mxu3 }
  0xfd   :  { %v763_v26 = vrot.slane %v511_v24, 2  ;;  %v336_v28 = vpop.f32.mrf.mxu0  ;;  %v860_v31 = vrot.slane %v600_v27, 3  ;;  %v425_v32 = vpop.f32.mrf.mxu1 }
  0xfe   :  { %v1075_v29 = vmax.f32 %v1073_v19, %v1074_v22  ;;  %v991_v30 = vmax.f32 %v959_v23, 0.0  ;;  %v665_v39 = vrot.slane %v425_v32, 1 }
  0xff   :  { %v805_v35 = vsel %vm784_vm2, %v762_v2, %v763_v26  ;;  %v902_v44 = vsel %vm881_vm3, %v859_v7, %v860_v31  ;;  %1446 = vmatmul.msk.bf16.gmra.mxu0 %vm248_vm0, %v1542_v25 }
 0x100   :  { %v1163_v40 = vpack.c.bf16 %v1075_v29, %v1075_v29  ;;  %v1025_v42 = vmul.f32 %v1848_v18, %v991_v30  ;;  %v827_v43 = vadd.f32 %v805_v35, %v730_v21  ;;  %v707_v45 = vsel %vm687_vm1, %v664_v11, %v665_v39  ;;  %1462 = vmatmul.msk.bf16.gmra.mxu1 %vm248_vm0, %v1542_v25 }
 0x101   :  { %1478 = vmatmul.msk.bf16.gmra.mxu2 %vm248_vm0, %v1542_v25  ;;  %v731_v50 = vadd.f32 %v707_v45, %v333_v4  ;;  %1494 = vmatmul.msk.bf16.gmra.mxu3 %vm248_vm0, %v1542_v25 }
 0x102   :  { %v1215_v46 = vunpack.c.l.b16 %v1163_v40  ;;  %v1076_v48 = vmax.f32 %v1024_v33, %v1025_v42  ;;  %v924_v49 = vadd.f32 %v902_v44, %v827_v43 }
 0x104   :  { %v1077_v52 = vrot.slane %v1076_v48, 4  ;;  %v514_v53 = vpop.f32.mrf.mxu2  ;;  %v1233_v54 = vsel %vm1232_vm6, %v1215_v46, %v1231_v1  ;;  %v603_v56 = vpop.f32.mrf.mxu3  ;;  %v960_v61 = vadd.f32 %v1836_v62, %v924_v49 }
 0x105   :  { %v764_v55 = vrot.slane %v514_v53, 2  ;;  %v338_v57 = vpop.f32.mrf.mxu0  ;;  %v861_v59 = vrot.slane %v603_v56, 3  ;;  %v427_v60 = vpop.f32.mrf.mxu1 }
 0x106   :  { %v1078_v58 = vmax.f32 %v1076_v48, %v1077_v52  ;;  %v666_v0 = vrot.slane %v427_v60, 1  ;;  %v992_v9 = vmax.f32 %v960_v61, 0.0 }
 0x107   :  { %v804_v63 = vsel %vm784_vm2, %v763_v26, %v764_v55  ;;  %v901_v4 = vsel %vm881_vm3, %v860_v31, %v861_v59 }
 0x108   :  { %v1079_v2 = vrot.slane %v1078_v58, 2  ;;  %v828_v3 = vadd.f32 %v804_v63, %v731_v50  ;;  %v706_v1 = vsel %vm687_vm1, %v665_v39, %v666_v0  ;;  %v1026_v23 = vmul.f32 %v1846_v17, %v992_v9 }
 0x109   :  { %v732_v7 = vadd.f32 %v706_v1, %v336_v28 }
 0x10a   :  { %v1080_v5 = vmax.f32 %v1078_v58, %v1079_v2  ;;  %v925_v6 = vadd.f32 %v901_v4, %v828_v3 }
 0x10c   :  { %v1081_v10 = vrot.slane %v1080_v5, 1  ;;  %v961_v11 = vadd.f32 %v1836_v62, %v925_v6  ;;  %v516_v13 = vpop.f32.mrf.mxu2  ;;  %v605_v12 = vpop.f32.mrf.mxu3 }
 0x10d   :  { %v765_v16 = vrot.slane %v516_v13, 2  ;;  %v341_v19 = vpop.f32.mrf.mxu0  ;;  %v862_v15 = vrot.slane %v605_v12, 3  ;;  %v430_v22 = vpop.f32.mrf.mxu1 }
 0x10e   :  { %v1082_v20 = vmax.f32 %v1080_v5, %v1081_v10  ;;  %v993_v21 = vmax.f32 %v961_v11, 0.0  ;;  %v667_v25 = vrot.slane %v430_v22, 1 }
 0x10f   :  { %v803_v24 = vsel %vm784_vm2, %v764_v55, %v765_v16  ;;  %v900_v29 = vsel %vm881_vm3, %v861_v59, %v862_v15  ;;  %1447 = vmatmul.msk.bf16.gmra.mxu0 %vm248_vm0, %v1543_v14 }
 0x110   :  { %v1164_v26 = vpack.c.bf16 %v1082_v20, %v1082_v20  ;;  %v1027_v27 = vmul.f32 %v1848_v18, %v993_v21  ;;  %v829_v28 = vadd.f32 %v803_v24, %v732_v7  ;;  %v705_v30 = vsel %vm687_vm1, %v666_v0, %v667_v25  ;;  %1463 = vmatmul.msk.bf16.gmra.mxu1 %vm248_vm0, %v1543_v14 }
 0x111   :  { %1479 = vmatmul.msk.bf16.gmra.mxu2 %vm248_vm0, %v1543_v14  ;;  %v733_v35 = vadd.f32 %v705_v30, %v338_v57  ;;  %1495 = vmatmul.msk.bf16.gmra.mxu3 %vm248_vm0, %v1543_v14 }
 0x112   :  { %v1216_v31 = vunpack.c.l.b16 %v1164_v26  ;;  %v1083_v32 = vmax.f32 %v1026_v23, %v1027_v27  ;;  %v926_v33 = vadd.f32 %v900_v29, %v829_v28 }
 0x114   :  { %v1084_v39 = vrot.slane %v1083_v32, 4  ;;  %v519_v40 = vpop.f32.mrf.mxu2  ;;  %v1235_v42 = vsel %vm1234_vm7, %v1216_v31, %v1233_v54  ;;  %v608_v44 = vpop.f32.mrf.mxu3  ;;  %v962_v50 = vadd.f32 %v1836_v62, %v926_v33 }
 0x115   :  { %v766_v43 = vrot.slane %v519_v40, 2  ;;  %v343_v45 = vpop.f32.mrf.mxu0  ;;  %v863_v48 = vrot.slane %v608_v44, 3  ;;  %v432_v49 = vpop.f32.mrf.mxu1 }
 0x116   :  { %v1085_v46 = vmax.f32 %v1083_v32, %v1084_v39  ;;  %v668_v53 = vrot.slane %v432_v49, 1  ;;  %v994_v61 = vmax.f32 %v962_v50, 0.0 }
 0x117   :  { %v802_v52 = vsel %vm784_vm2, %v765_v16, %v766_v43  ;;  %v899_v57 = vsel %vm881_vm3, %v862_v15, %v863_v48 }
 0x118   :  { %v1086_v55 = vrot.slane %v1085_v46, 2  ;;  %v830_v56 = vadd.f32 %v802_v52, %v733_v35  ;;  %v704_v54 = vsel %vm687_vm1, %v667_v25, %v668_v53  ;;  %v1028_v9 = vmul.f32 %v1846_v17, %v994_v61 }
 0x119   :  { %v734_v60 = vadd.f32 %v704_v54, %v341_v19 }
 0x11a   :  { %v1087_v58 = vmax.f32 %v1085_v46, %v1086_v55  ;;  %v927_v59 = vadd.f32 %v899_v57, %v830_v56 }
 0x11c   :  { %v1088_v63 = vrot.slane %v1087_v58, 1  ;;  %v963_v0 = vadd.f32 %v1836_v62, %v927_v59  ;;  %v521_v2 = vpop.f32.mrf.mxu2  ;;  %v610_v4 = vpop.f32.mrf.mxu3 }
 0x11d   :  { %v767_v3 = vrot.slane %v521_v2, 2  ;;  %v346_v1 = vpop.f32.mrf.mxu0  ;;  %v864_v6 = vrot.slane %v610_v4, 3  ;;  %v435_v7 = vpop.f32.mrf.mxu1 }
 0x11e   :  { %v995_v5 = vmax.f32 %v963_v0, 0.0  ;;  %v1089_v8 = vmax.f32 %v1087_v58, %v1088_v63  ;;  %v669_v11 = vrot.slane %v435_v7, 1 }
 0x11f   :  { %v801_v10 = vsel %vm784_vm2, %v766_v43, %v767_v3  ;;  %v898_v16 = vsel %vm881_vm3, %v863_v48, %v864_v6 }
 0x120   :  { %v1029_v13 = vmul.f32 %v1848_v18, %v995_v5  ;;  %v831_v14 = vadd.f32 %v801_v10, %v734_v60  ;;  %v1165_v12 = vpack.c.bf16 %v1089_v8, %v1089_v8  ;;  %v703_v19 = vsel %vm687_vm1, %v668_v53, %v669_v11  ;;  %v1555_v8 = vld [vmem:[#allocation8 + $0x18] sm:$0xff] }
 0x121   :  { %v735_v15 = vadd.f32 %v703_v19, %v343_v45  ;;  %1303 = vmatpush.bf16.msrb.mxu0 %v1555_v8 }
 0x122   :  { %v1090_v20 = vmax.f32 %v1028_v9, %v1029_v13  ;;  %v928_v21 = vadd.f32 %v898_v16, %v831_v14  ;;  %v1217_v22 = vunpack.c.l.b16 %v1165_v12 }
 0x124   :  { %v1091_v23 = vrot.slane %v1090_v20, 4  ;;  %v524_v24 = vpop.f32.mrf.mxu2  ;;  %v1237_v25 = vsel %vm1236_vm8, %v1217_v22, %v1235_v42  ;;  %v613_v27 = vpop.f32.mrf.mxu3  ;;  %v964_v32 = vadd.f32 %v1836_v62, %v928_v21 }
 0x125   :  { %v768_v26 = vrot.slane %v524_v24, 2  ;;  %v348_v28 = vpop.f32.mrf.mxu0  ;;  %v865_v30 = vrot.slane %v613_v27, 3  ;;  %v437_v31 = vpop.f32.mrf.mxu1 }
 0x126   :  { %v1092_v29 = vmax.f32 %v1090_v20, %v1091_v23  ;;  %v670_v35 = vrot.slane %v437_v31, 1  ;;  %v996_v48 = vmax.f32 %v964_v32, 0.0 }
 0x127   :  { %v800_v33 = vsel %vm784_vm2, %v767_v3, %v768_v26  ;;  %v897_v43 = vsel %vm881_vm3, %v864_v6, %v865_v30 }
 0x128   :  { %v1093_v39 = vrot.slane %v1092_v29, 2  ;;  %v832_v40 = vadd.f32 %v800_v33, %v735_v15  ;;  %v702_v42 = vsel %vm687_vm1, %v669_v11, %v670_v35  ;;  %v1030_v60 = vmul.f32 %v1846_v17, %v996_v48 }
 0x129   :  { %v736_v46 = vadd.f32 %v702_v42, %v346_v1 }
 0x12a   :  { %v1094_v44 = vmax.f32 %v1092_v29, %v1093_v39  ;;  %v929_v45 = vadd.f32 %v897_v43, %v832_v40 }
 0x12c   :  { %v965_v49 = vadd.f32 %v1836_v62, %v929_v45  ;;  %v526_v50 = vpop.f32.mrf.mxu2  ;;  %v1095_v52 = vrot.slane %v1094_v44, 1  ;;  %v615_v55 = vpop.f32.mrf.mxu3 }
 0x12d   :  { %v769_v53 = vrot.slane %v526_v50, 2  ;;  %v351_v56 = vpop.f32.mrf.mxu0  ;;  %v866_v54 = vrot.slane %v615_v55, 3  ;;  %v440_v58 = vpop.f32.mrf.mxu1 }
 0x12e   :  { %v997_v57 = vmax.f32 %v965_v49, 0.0  ;;  %v1096_v59 = vmax.f32 %v1094_v44, %v1095_v52  ;;  %v671_v63 = vrot.slane %v440_v58, 1 }
 0x12f   :  { %v799_v61 = vsel %vm784_vm2, %v768_v26, %v769_v53  ;;  %v896_v3 = vsel %vm881_vm3, %v865_v30, %v866_v54 }
 0x130   :  { %v1031_v0 = vmul.f32 %v1848_v18, %v997_v57  ;;  %v833_v2 = vadd.f32 %v799_v61, %v736_v46  ;;  %v1166_v4 = vpack.c.bf16 %v1096_v59, %v1096_v59  ;;  %v701_v1 = vsel %vm687_vm1, %v670_v35, %v671_v63 }
 0x131   :  { %v737_v7 = vadd.f32 %v701_v1, %v348_v28 }
 0x132   :  { %v1097_v5 = vmax.f32 %v1030_v60, %v1031_v0  ;;  %v930_v6 = vadd.f32 %v896_v3, %v833_v2  ;;  %v1218_v9 = vunpack.c.l.b16 %v1166_v4 }
 0x134   :  { %v1098_v10 = vrot.slane %v1097_v5, 4  ;;  %v529_v11 = vpop.f32.mrf.mxu2  ;;  %v1239_v13 = vsel %vm1238_vm9, %v1218_v9, %v1237_v25  ;;  %v618_v16 = vpop.f32.mrf.mxu3  ;;  %v966_v15 = vadd.f32 %v1836_v62, %v930_v6 }
 0x135   :  { %v770_v14 = vrot.slane %v529_v11, 2  ;;  %v353_v12 = vpop.f32.mrf.mxu0  ;;  %v867_v20 = vrot.slane %v618_v16, 3  ;;  %v442_v21 = vpop.f32.mrf.mxu1 }
 0x136   :  { %v1099_v19 = vmax.f32 %v1097_v5, %v1098_v10  ;;  %v672_v23 = vrot.slane %v442_v21, 1  ;;  %v998_v31 = vmax.f32 %v966_v15, 0.0 }
 0x137   :  { %v798_v22 = vsel %vm784_vm2, %v769_v53, %v770_v14  ;;  %v895_v27 = vsel %vm881_vm3, %v866_v54, %v867_v20 }
 0x138   :  { %v1100_v24 = vrot.slane %v1099_v19, 2  ;;  %v834_v26 = vadd.f32 %v798_v22, %v737_v7  ;;  %v700_v25 = vsel %vm687_vm1, %v671_v63, %v672_v23  ;;  %v1032_v48 = vmul.f32 %v1846_v17, %v998_v31 }
 0x139   :  { %v738_v29 = vadd.f32 %v700_v25, %v351_v56 }
 0x13a   :  { %v931_v28 = vadd.f32 %v895_v27, %v834_v26  ;;  %v1101_v30 = vmax.f32 %v1099_v19, %v1100_v24 }
 0x13c   :  { %v967_v32 = vadd.f32 %v1836_v62, %v931_v28  ;;  %v531_v33 = vpop.f32.mrf.mxu2  ;;  %v1102_v35 = vrot.slane %v1101_v30, 1  ;;  %v620_v40 = vpop.f32.mrf.mxu3 }
 0x13d   :  { %v771_v39 = vrot.slane %v531_v33, 2  ;;  %v356_v43 = vpop.f32.mrf.mxu0  ;;  %v868_v44 = vrot.slane %v620_v40, 3  ;;  %v445_v45 = vpop.f32.mrf.mxu1 }
 0x13e   :  { %v999_v42 = vmax.f32 %v967_v32, 0.0  ;;  %v1103_v46 = vmax.f32 %v1101_v30, %v1102_v35  ;;  %v673_v50 = vrot.slane %v445_v45, 1 }
 0x13f   :  { %v797_v49 = vsel %vm784_vm2, %v770_v14, %v771_v39  ;;  %v894_v55 = vsel %vm881_vm3, %v867_v20, %v868_v44 }
 0x140   :  { %v1033_v52 = vmul.f32 %v1848_v18, %v999_v42  ;;  %v835_v53 = vadd.f32 %v797_v49, %v738_v29  ;;  %v1167_v56 = vpack.c.bf16 %v1103_v46, %v1103_v46  ;;  %v699_v57 = vsel %vm687_vm1, %v672_v23, %v673_v50  ;;  %v1554_v42 = vld [vmem:[#allocation8 + $0x10] sm:$0xff] }
 0x141   :  { %v739_v59 = vadd.f32 %v699_v57, %v353_v12  ;;  %1304 = vmatpush.bf16.msrb.mxu0 %v1554_v42 }
 0x142   :  { %v1104_v54 = vmax.f32 %v1032_v48, %v1033_v52  ;;  %v932_v58 = vadd.f32 %v894_v55, %v835_v53  ;;  %v1219_v60 = vunpack.c.l.b16 %v1167_v56 }
 0x144   :  { %v534_v61 = vpop.f32.mrf.mxu2  ;;  %v2017_v63 = vsel %vm1240_vm10, %v1219_v60, %v1239_v13  ;;  %v623_v2 = vpop.f32.mrf.mxu3  ;;  %v1105_v4 = vrot.slane %v1104_v54, 4  ;;  %v968_v8 = vadd.f32 %v1836_v62, %v932_v58 }
 0x145   :  { %v772_v0 = vrot.slane %v534_v61, 2  ;;  %v358_v3 = vpop.f32.mrf.mxu0  ;;  %v869_v1 = vrot.slane %v623_v2, 3  ;;  %v447_v5 = vpop.f32.mrf.mxu1 }
 0x146   :  { %v674_v7 = vrot.slane %v447_v5, 1  ;;  %v1106_v13 = vmax.f32 %v1104_v54, %v1105_v4  ;;  %v1000_v12 = vmax.f32 %v968_v8, 0.0 }
 0x147   :  { %v796_v6 = vsel %vm784_vm2, %v771_v39, %v772_v0  ;;  %v893_v10 = vsel %vm881_vm3, %v868_v44, %v869_v1 }
 0x148   :  { %v836_v9 = vadd.f32 %v796_v6, %v739_v59  ;;  %v698_v11 = vsel %vm687_vm1, %v673_v50, %v674_v7  ;;  %v1107_v23 = vrot.slane %v1106_v13, 2  ;;  %v1034_v29 = vmul.f32 %v1846_v17, %v1000_v12 }
 0x149   :  { %v740_v16 = vadd.f32 %v698_v11, %v356_v43 }
 0x14a   :  { %v933_v14 = vadd.f32 %v893_v10, %v836_v9  ;;  %v1108_v35 = vmax.f32 %v1106_v13, %v1107_v23 }
 0x14c   :  { %v969_v19 = vadd.f32 %v1836_v62, %v933_v14  ;;  %v536_v20 = vpop.f32.mrf.mxu2  ;;  %v625_v15 = vpop.f32.mrf.mxu3  ;;  %v1109_v50 = vrot.slane %v1108_v35, 1 }
 0x14d   :  { %v773_v21 = vrot.slane %v536_v20, 2  ;;  %v361_v22 = vpop.f32.mrf.mxu0  ;;  %v870_v26 = vrot.slane %v625_v15, 3  ;;  %v450_v27 = vpop.f32.mrf.mxu1 }
 0x14e   :  { %v1001_v24 = vmax.f32 %v969_v19, 0.0  ;;  %v675_v28 = vrot.slane %v450_v27, 1 }
 0x14f   :  { %v795_v25 = vsel %vm784_vm2, %v772_v0, %v773_v21  ;;  %v892_v32 = vsel %vm881_vm3, %v869_v1, %v870_v26  ;;  %v1110_v0 = vmax.f32 %v1108_v35, %v1109_v50 }
 0x150   :  { %v1035_v30 = vmul.f32 %v1848_v18, %v1001_v24  ;;  %v837_v31 = vadd.f32 %v795_v25, %v740_v16  ;;  %v697_v33 = vsel %vm687_vm1, %v674_v7, %v675_v28 }
 0x151   :  { %v741_v43 = vadd.f32 %v697_v33, %v358_v3  ;;  %v1168_v11 = vpack.c.bf16 %v1110_v0, %v1110_v0 }
 0x152   :  { %v1111_v39 = vmax.f32 %v1034_v29, %v1035_v30  ;;  %v934_v40 = vadd.f32 %v892_v32, %v837_v31 }
 0x153   :  { %v1220_v24 = vunpack.c.l.b16 %v1168_v11 }
 0x154   :  { %v1112_v44 = vrot.slane %v1111_v39, 4  ;;  %v539_v45 = vpop.f32.mrf.mxu2  ;;  %v628_v48 = vpop.f32.mrf.mxu3  ;;  %v970_v58 = vadd.f32 %v1836_v62, %v934_v40 }
 0x155   :  { %v774_v46 = vrot.slane %v539_v45, 2  ;;  %v363_v49 = vpop.f32.mrf.mxu0  ;;  %v871_v53 = vrot.slane %v628_v48, 3  ;;  %v452_v55 = vpop.f32.mrf.mxu1 }
 0x156   :  { %v1113_v52 = vmax.f32 %v1111_v39, %v1112_v44  ;;  %v676_v57 = vrot.slane %v452_v55, 1  ;;  %v1002_v5 = vmax.f32 %v970_v58, 0.0 }
 0x157   :  { %v794_v56 = vsel %vm784_vm2, %v773_v21, %v774_v46  ;;  %v891_v60 = vsel %vm881_vm3, %v870_v26, %v871_v53 }
 0x158   :  { %v1114_v54 = vrot.slane %v1113_v52, 2  ;;  %v838_v59 = vadd.f32 %v794_v56, %v741_v43  ;;  %v696_v61 = vsel %vm687_vm1, %v675_v28, %v676_v57  ;;  %v1036_v15 = vmul.f32 %v1846_v17, %v1002_v5 }
 0x159   :  { %v742_v4 = vadd.f32 %v696_v61, %v361_v22 }
 0x15a   :  { %v1115_v2 = vmax.f32 %v1113_v52, %v1114_v54  ;;  %v935_v3 = vadd.f32 %v891_v60, %v838_v59 }
 0x15c   :  { %v1116_v1 = vrot.slane %v1115_v2, 1  ;;  %v971_v6 = vadd.f32 %v1836_v62, %v935_v3  ;;  %v541_v7 = vpop.f32.mrf.mxu2  ;;  %v630_v9 = vpop.f32.mrf.mxu3 }
 0x15d   :  { %v775_v8 = vrot.slane %v541_v7, 2  ;;  %v2043_v10 = vpop.f32.mrf.mxu0  ;;  %v872_v16 = vrot.slane %v630_v9, 3  ;;  %v2045_v12 = vpop.f32.mrf.mxu1 }
 0x15e   :  { %v1117_v13 = vmax.f32 %v1115_v2, %v1116_v1  ;;  %v1003_v14 = vmax.f32 %v971_v6, 0.0  ;;  %v677_v20 = vrot.slane %v2045_v12, 1  ;;  %v1553_v6 = vld [vmem:[#allocation8 + $0x8] sm:$0xff] }
 0x15f   :  { %v793_v19 = vsel %vm784_vm2, %v774_v46, %v775_v8  ;;  %v890_v23 = vsel %vm881_vm3, %v871_v53, %v872_v16  ;;  %v2067_v46 = vld [vmem:[%s2171_s2] ss:$0 sm:$0xff]  ;;  %1305 = vmatpush.bf16.msrb.mxu0 %v1553_v6 }
 0x160   :  { %v1169_v21 = vpack.c.bf16 %v1117_v13, %v1117_v13  ;;  %v1037_v62 = vmul.f32 %v1848_v18, %v1003_v14  ;;  %v839_v22 = vadd.f32 %v793_v19, %v742_v4  ;;  %v695_v28 = vsel %vm687_vm1, %v676_v57, %v677_v20 }
 0x161   :  { %v743_v40 = vadd.f32 %v695_v28, %v363_v49 }
 0x162   :  { %v1221_v26 = vunpack.c.l.b16 %v1169_v21  ;;  %v1118_v27 = vmax.f32 %v1036_v15, %v1037_v62  ;;  %v936_v25 = vadd.f32 %v890_v23, %v839_v22 }
 0x164   :  { %v1119_v29 = vrot.slane %v1118_v27, 4  ;;  %v544_v30 = vpop.f32.mrf.mxu2  ;;  %v1242_v31 = vsel %vm1228_vm4, %v1221_v26, %v1220_v24  ;;  %v2059_v33 = vpop.f32.mrf.mxu3  ;;  %v972_v48 = vadd.f32 %v2067_v46, %v936_v25 }
 0x165   :  { %v776_v32 = vrot.slane %v544_v30, 2  ;;  %v368_v35 = vpop.f32.mrf.mxu0  ;;  %v873_v43 = vrot.slane %v2059_v33, 3  ;;  %v457_v42 = vpop.f32.mrf.mxu1 }
 0x166   :  { %v1120_v39 = vmax.f32 %v1118_v27, %v1119_v29  ;;  %v1004_v56 = vmax.f32 %v972_v48, 0.0  ;;  %v678_v15 = vrot.slane %v457_v42, 1 }
 0x167   :  { %v792_v44 = vsel %vm784_vm2, %v775_v8, %v776_v32  ;;  %v889_v49 = vsel %vm881_vm3, %v872_v16, %v873_v43 }
 0x168   :  { %v1121_v45 = vrot.slane %v1120_v39, 2  ;;  %v840_v50 = vadd.f32 %v792_v44, %v743_v40  ;;  %v1038_v3 = vmul.f32 %v1846_v17, %v1004_v56  ;;  %v694_v27 = vsel %vm687_vm1, %v677_v20, %v678_v15 }
 0x169   :  { %v744_v48 = vadd.f32 %v694_v27, %v2043_v10 }
 0x16a   :  { %v1122_v52 = vmax.f32 %v1120_v39, %v1121_v45  ;;  %v937_v53 = vadd.f32 %v889_v49, %v840_v50 }
 0x16c   :  { %v1123_v55 = vrot.slane %v1122_v52, 1  ;;  %v973_v57 = vadd.f32 %v2067_v46, %v937_v53  ;;  %v546_v54 = vpop.f32.mrf.mxu2  ;;  %v635_v58 = vpop.f32.mrf.mxu3 }
 0x16d   :  { %v371_v59 = vpop.f32.mrf.mxu0  ;;  %v460_v0 = vpop.f32.mrf.mxu1  ;;  %v777_v23 = vrot.slane %v546_v54, 2  ;;  %v874_v49 = vrot.slane %v635_v58, 3 }
 0x16e   :  { %v1124_v60 = vmax.f32 %v1122_v52, %v1123_v55  ;;  %v1005_v61 = vmax.f32 %v973_v57, 0.0  ;;  %v679_v21 = vrot.slane %v460_v0, 1 }
 0x16f   :  { %v791_v40 = vsel %vm784_vm2, %v776_v32, %v777_v23  ;;  %v888_v58 = vsel %vm881_vm3, %v873_v43, %v874_v49 }
 0x170   :  { %v1170_v2 = vpack.c.bf16 %v1124_v60, %v1124_v60  ;;  %v1039_v4 = vmul.f32 %v1848_v18, %v1005_v61  ;;  %v693_v24 = vsel %vm687_vm1, %v678_v15, %v679_v21  ;;  %v841_v56 = vadd.f32 %v791_v40, %v744_v48 }
 0x171   :  { %v745_v42 = vadd.f32 %v693_v24, %v368_v35 }
 0x172   :  { %v1222_v1 = vunpack.c.l.b16 %v1170_v2  ;;  %v1125_v5 = vmax.f32 %v1038_v3, %v1039_v4  ;;  %v938_v2 = vadd.f32 %v888_v58, %v841_v56 }
 0x174   :  { %v1126_v7 = vrot.slane %v1125_v5, 4  ;;  %v549_v8 = vpop.f32.mrf.mxu2  ;;  %v1243_v9 = vsel %vm1230_vm5, %v1222_v1, %v1242_v31  ;;  %v638_v11 = vpop.f32.mrf.mxu3 }
 0x175   :  { %v373_v13 = vpop.f32.mrf.mxu0  ;;  %v462_v16 = vpop.f32.mrf.mxu1  ;;  %v778_v22 = vrot.slane %v549_v8, 2  ;;  %v875_v20 = vrot.slane %v638_v11, 3 }
 0x176   :  { %v1127_v14 = vmax.f32 %v1125_v5, %v1126_v7  ;;  %v680_v17 = vrot.slane %v462_v16, 1 }
 0x177   :  { %v790_v30 = vsel %vm784_vm2, %v777_v23, %v778_v22  ;;  %v887_v35 = vsel %vm881_vm3, %v874_v49, %v875_v20 }
 0x178   :  { %v1128_v19 = vrot.slane %v1127_v14, 2  ;;  %v692_v31 = vsel %vm687_vm1, %v679_v21, %v680_v17  ;;  %v842_v52 = vadd.f32 %v790_v30, %v745_v42  ;;  %v1552_v42 = vld [vmem:[#allocation8] sm:$0xff] }
 0x179   :  { %v746_v53 = vadd.f32 %v692_v31, %v371_v59  ;;  %v2118_v31 = vld [vmem:[#allocation7 + $0x8] sm:$0xff]  ;;  %1306 = vmatpush.bf16.msrb.mxu0 %v1552_v42 }
 0x17a   :  { %v1129_v62 = vmax.f32 %v1127_v14, %v1128_v19  ;;  %v939_v59 = vadd.f32 %v887_v35, %v842_v52  ;;  %v974_v14 = vadd.f32 %v2067_v46, %v938_v2 }
 0x17c   :  { %v1130_v18 = vrot.slane %v1129_v62, 1  ;;  %v551_v26 = vpop.f32.mrf.mxu2  ;;  %v640_v28 = vpop.f32.mrf.mxu3  ;;  %v975_v33 = vadd.f32 %v2067_v46, %v939_v59  ;;  %v1006_v23 = vmax.f32 %v974_v14, 0.0 }
 0x17d   :  { %v779_v25 = vrot.slane %v551_v26, 2  ;;  %v465_v39 = vpop.f32.mrf.mxu1  ;;  %v376_v44 = vpop.f32.mrf.mxu0  ;;  %v876_v57 = vrot.slane %v640_v28, 3 }
 0x17e   :  { %v1131_v29 = vmax.f32 %v1129_v62, %v1130_v18  ;;  %v681_v45 = vrot.slane %v465_v39, 1  ;;  %v1007_v62 = vmax.f32 %v975_v33, 0.0 }
 0x17f   :  { %v789_v50 = vsel %vm784_vm2, %v778_v22, %v779_v25  ;;  %v886_v3 = vsel %vm881_vm3, %v875_v20, %v876_v57 }
 0x180   :  { %v1171_v12 = vpack.c.bf16 %v1131_v29, %v1131_v29  ;;  %v843_v54 = vadd.f32 %v789_v50, %v746_v53  ;;  %v691_v32 = vsel %vm687_vm1, %v680_v17, %v681_v45  ;;  %v1041_v39 = vmul.f32 %v2118_v31, %v1007_v62 }
 0x181   :  { %v747_v4 = vadd.f32 %v691_v32, %v373_v13 }
 0x182   :  { %v1223_v55 = vunpack.c.l.b16 %v1171_v12  ;;  %v940_v6 = vadd.f32 %v886_v3, %v843_v54 }
 0x184   :  { %v554_v60 = vpop.f32.mrf.mxu2  ;;  %v2098_v10 = vsel %vm1232_vm6, %v1223_v55, %v1243_v9  ;;  %v643_v0 = vpop.f32.mrf.mxu3  ;;  %v976_v19 = vadd.f32 %v2067_v46, %v940_v6 }
 0x185   :  { %v780_v61 = vrot.slane %v554_v60, 2  ;;  %v877_v1 = vrot.slane %v643_v0, 3  ;;  %v467_v5 = vpop.f32.mrf.mxu1  ;;  %v378_v11 = vpop.f32.mrf.mxu0 }
 0x186   :  { %v682_v8 = vrot.slane %v467_v5, 1  ;;  %v1008_v27 = vmax.f32 %v976_v19, 0.0 }
 0x187   :  { %v788_v7 = vsel %vm784_vm2, %v779_v25, %v780_v61  ;;  %v885_v43 = vsel %vm881_vm3, %v876_v57, %v877_v1 }
 0x188   :  { %v844_v9 = vadd.f32 %v788_v7, %v747_v4  ;;  %v690_v13 = vsel %vm687_vm1, %v681_v45, %v682_v8  ;;  %v1575_v45 = vld [vmem:[#allocation7] sm:$0xff] }
 0x189   :  { %v748_v24 = vadd.f32 %v690_v13, %v376_v44  ;;  %v1040_v12 = vmul.f32 %v1575_v45, %v1006_v23  ;;  %v1042_v48 = vmul.f32 %v1575_v45, %v1008_v27 }
 0x18a   :  { %v941_v16 = vadd.f32 %v885_v43, %v844_v9 }
 0x18b   :  { %v1132_v53 = vmax.f32 %v1040_v12, %v1041_v39 }
 0x18c   :  { %v977_v21 = vadd.f32 %v2067_v46, %v941_v16  ;;  %v556_v15 = vpop.f32.mrf.mxu2  ;;  %v645_v17 = vpop.f32.mrf.mxu3 }
 0x18d   :  { %v781_v22 = vrot.slane %v556_v15, 2  ;;  %v470_v26 = vpop.f32.mrf.mxu1  ;;  %v878_v28 = vrot.slane %v645_v17, 3  ;;  %v381_v20 = vpop.f32.mrf.mxu0  ;;  %v1133_v0 = vrot.slane %v1132_v53, 4 }
 0x18e   :  { %v1009_v18 = vmax.f32 %v977_v21, 0.0  ;;  %v683_v29 = vrot.slane %v470_v26, 1 }
 0x18f   :  { %v787_v25 = vsel %vm784_vm2, %v780_v61, %v781_v22  ;;  %v884_v44 = vsel %vm881_vm3, %v877_v1, %v878_v28  ;;  %v1134_v9 = vmax.f32 %v1132_v53, %v1133_v0 }
 0x190   :  { %v845_v30 = vadd.f32 %v787_v25, %v748_v24  ;;  %v1043_v40 = vmul.f32 %v2118_v31, %v1009_v18  ;;  %v689_v50 = vsel %vm687_vm1, %v682_v8, %v683_v29 }
 0x191   :  { %v749_v54 = vadd.f32 %v689_v50, %v378_v11  ;;  %v1135_v23 = vrot.slane %v1134_v9, 2 }
 0x192   :  { %v942_v49 = vadd.f32 %v884_v44, %v845_v30  ;;  %v1139_v55 = vmax.f32 %v1042_v48, %v1043_v40 }
 0x193   :  { %v1136_v30 = vmax.f32 %v1134_v9, %v1135_v23 }
 0x194   :  { %v559_v52 = vpop.f32.mrf.mxu2  ;;  %v648_v57 = vpop.f32.mrf.mxu3  ;;  %v978_v59 = vadd.f32 %v2067_v46, %v942_v49  ;;  %v1140_v2 = vrot.slane %v1139_v55, 4 }
 0x195   :  { %v782_v56 = vrot.slane %v559_v52, 2  ;;  %v879_v32 = vrot.slane %v648_v57, 3  ;;  %v472_v35 = vpop.f32.mrf.mxu1  ;;  %v383_v43 = vpop.f32.mrf.mxu0  ;;  %v1137_v36 = vrot.slane %v1136_v30, 1 }
 0x196   :  { %v684_v58 = vrot.slane %v472_v35, 1  ;;  %v1010_v6 = vmax.f32 %v978_v59, 0.0  ;;  %v1141_v33 = vmax.f32 %v1139_v55, %v1140_v2 }
 0x197   :  { %v786_v60 = vsel %vm784_vm2, %v781_v22, %v782_v56  ;;  %v883_v3 = vsel %vm881_vm3, %v878_v28, %v879_v32  ;;  %v1138_v53 = vmax.f32 %v1136_v30, %v1137_v36 }
 0x198   :  { %v846_v61 = vadd.f32 %v786_v60, %v749_v54  ;;  %v688_v1 = vsel %vm687_vm1, %v683_v29, %v684_v58  ;;  %v719_v5 = vsel %vm687_vm1, %v684_v58, %v653_v41  ;;  %v1044_v41 = vmul.f32 %v1575_v45, %v1010_v6 }
 0x199   :  { %v750_v19 = vadd.f32 %v688_v1, %v381_v20  ;;  %v751_v13 = vadd.f32 %v719_v5, %v383_v43  ;;  %v1142_v26 = vrot.slane %v1141_v33, 2  ;;  %v1172_v54 = vpack.c.bf16 %v1138_v53, %v1138_v53 }
 0x19a   :  { %v943_v4 = vadd.f32 %v883_v3, %v846_v61 }
 0x19b   :  { %v1143_v39 = vmax.f32 %v1141_v33, %v1142_v26  ;;  %v1224_v59 = vunpack.c.l.b16 %v1172_v54 }
 0x19c   :  { %v979_v7 = vadd.f32 %v2067_v46, %v943_v4  ;;  %v561_v8 = vpop.f32.mrf.mxu2  ;;  %v650_v14 = vpop.f32.mrf.mxu3 }
 0x19d   :  { %v783_v11 = vrot.slane %v561_v8, 2  ;;  %v880_v21 = vrot.slane %v650_v14, 3  ;;  %v1245_v2 = vsel %vm1234_vm7, %v1224_v59, %v2098_v10 }
 0x19e   :  { %v1011_v16 = vmax.f32 %v979_v7, 0.0  ;;  %v1572_v7 = vld [vmem:[%s2174_s5] ss:$0 sm:$0xff] }
 0x19f   :  { %v785_v15 = vsel %vm784_vm2, %v782_v56, %v783_v11  ;;  %v816_v34 = vsel %vm784_vm2, %v783_v11, %v752_v47  ;;  %v882_v18 = vsel %vm881_vm3, %v879_v32, %v880_v21  ;;  %v913_v24 = vsel %vm881_vm3, %v880_v21, %v849_v51 }
 0x1a0   :  { %v1045_v62 = vmul.f32 %v2118_v31, %v1011_v16  ;;  %v847_v22 = vadd.f32 %v785_v15, %v750_v19  ;;  %v848_v17 = vadd.f32 %v816_v34, %v751_v13  ;;  %v1144_v51 = vrot.slane %v1143_v39, 1 }
 0x1a2   :  { %v1146_v27 = vmax.f32 %v1044_v41, %v1045_v62  ;;  %v944_v37 = vadd.f32 %v882_v18, %v847_v22  ;;  %v945_v25 = vadd.f32 %v913_v24, %v848_v17  ;;  %v1145_v56 = vmax.f32 %v1143_v39, %v1144_v51 }
 0x1a4   :  { %v1147_v28 = vrot.slane %v1146_v27, 4  ;;  %v980_v47 = vadd.f32 %v2067_v46, %v944_v37  ;;  %v981_v29 = vadd.f32 %v2067_v46, %v945_v25  ;;  %v1173_v35 = vpack.c.bf16 %v1145_v56, %v1145_v56 }
 0x1a6   :  { %v1148_v40 = vmax.f32 %v1146_v27, %v1147_v28  ;;  %v1012_v42 = vmax.f32 %v980_v47, 0.0  ;;  %v1013_v12 = vmax.f32 %v981_v29, 0.0  ;;  %v1225_v61 = vunpack.c.l.b16 %v1173_v35 }
 0x1a8   :  { %v1149_v48 = vrot.slane %v1148_v40, 2  ;;  %v1046_v44 = vmul.f32 %v1575_v45, %v1012_v42  ;;  %v1047_v38 = vmul.f32 %v2118_v31, %v1013_v12  ;;  %v1246_v4 = vsel %vm1236_vm8, %v1225_v61, %v1245_v2 }
 0x1aa   :  { %v1150_v20 = vmax.f32 %v1148_v40, %v1149_v48  ;;  %v1153_v50 = vmax.f32 %v1046_v44, %v1047_v38 }
 0x1ac   :  { %v1154_v49 = vrot.slane %v1153_v50, 4  ;;  %v1151_v52 = vrot.slane %v1150_v20, 1 }
 0x1ae   :  { %v1155_v55 = vmax.f32 %v1153_v50, %v1154_v49  ;;  %v1152_v57 = vmax.f32 %v1150_v20, %v1151_v52 }
 0x1b0   :  { %v1156_v46 = vrot.slane %v1155_v55, 2  ;;  %v1174_v60 = vpack.c.bf16 %v1152_v57, %v1152_v57 }
 0x1b2   :  { %v1157_v32 = vmax.f32 %v1155_v55, %v1156_v46  ;;  %v1226_v31 = vunpack.c.l.b16 %v1174_v60 }
 0x1b4   :  { %v1158_v58 = vrot.slane %v1157_v32, 1  ;;  %v1247_v1 = vsel %vm1238_vm9, %v1226_v31, %v1246_v4 }
 0x1b6   :  { %v1159_v45 = vmax.f32 %v1157_v32, %v1158_v58 }
 0x1b8   :  { %v1175_v0 = vpack.c.bf16 %v1159_v45, %v1159_v45 }
 0x1ba   :  { %v1227_v3 = vunpack.c.l.b16 %v1175_v0 }
 0x1bc   :  { %v1248_v5 = vsel %vm1240_vm10, %v1227_v3, %v1247_v1 }
 0x1bd   :  { %v1249_v6 = vpack.c.b16 %v1248_v5, %v2017_v63 }
 0x1bf   :  { %1307 = vmatmul.bf16.vlgmr.msrb.gmra.mxu0 %v1249_v6 }
 0x23c   :  { %v1308_v8 = vpop.f32.mrf.mxu0 }
 0x23d   :  { %v1309_v9 = vadd.f32 %v1572_v7, %v1308_v8 }
 0x23f   :  { %1313 = vst [vmem:[#allocation10] sm:$0xff] %v1309_v9 }
 0x244   :  { %v1310_v10 = vpop.f32.mrf.mxu0 }
 0x245   :  { %v1311_v33 = vadd.f32 %v1572_v7, %v1310_v10 }
 0x247   :  { %1314 = vst [vmem:[#allocation10 + $0x8] sm:$0xff] %v1311_v33 }
 0x248   :  { %1327 = dma.vmem_to_hbm [thread:$0]  %s1320_s25, 256, %s1322_s28, [#allocation4], %s1711_s17, %s1711_s17, %s1712_s18  }
 0x249   :  { %1702 = dma.done.wait [#allocation4], 256  }
 0x24a   :  { %1703 = vsyncadd [#allocation4], 4294967040 }
 0x24b   :  { %1332 = vsyncpa [#allocation3], 1 }
 0x24c   :  { %1333 = vsyncpa [#allocation6], 1 }
 0x24d   :  { %1334 = vsyncpa [#allocation9], 1 }
 0x24e   :  { %1335 = vsyncpa [#allocation4], 1 }

</bundles_post_ra>
